<compile_context>
chip_gen: v7x
topology: tpu7x:2x2x1
jax: 0.10.0
libtpu: 0.0.40
codegen_flags: <defaults>
</compile_context>

<pallas_src>
import functools

import jax
import jax.numpy as jnp
from jax.experimental import pallas as pl
from jax.experimental.pallas import tpu as pltpu


# ------------------------------------------------------------------------------------
# Kernel
# ------------------------------------------------------------------------------------
def _csgrl_fused_kernel(x_ref, *refs, n_layers, layer_acts, clip_len, use_l1,
                        fold_residual, tanh_bf16):
    """One grid step: a (tb, C, t_hw) feature block through all K1 AutoEncoders.

    refs = (w0T, ..., w{L-1}T, sumT_ref, out_ref)
      w0T        : (K1*C1, C)              bf16, per-class weights stacked on rows
      wLT (L>0)  : (K1*Cout, K1*Cin)       bf16, block-diagonal per class; the last one
                   is (K1*C, K1*Cin + C) when fold_residual (x-subtraction folded in)
      sumT_ref   : (K1, K1*C)              bf16, block-sum matrix pre-scaled by `reduction`
      out_ref    : (tb, K1, t_hw)          f32, clipped per-class recon-error logits
    """
    w_refs = refs[:n_layers]
    sum_ref = refs[n_layers]
    out_ref = refs[n_layers + 1]

    k1 = sum_ref.shape[0]
    ws = [r[...] for r in w_refs]          # small, grid-invariant; load once per step
    sum_t = sum_ref[...]

    tb = x_ref.shape[0]
    for b in range(tb):                    # static unroll over the batch slab
        x_f32 = x_ref[b]                   # (C, t_hw) f32
        x_bf = x_f32.astype(jnp.bfloat16)

        # Fused AE chain: bf16 MXU operands, f32 accumulation.
        h = x_bf
        for l in range(n_layers - 1):
            h = jnp.dot(ws[l], h, preferred_element_type=jnp.float32)
            if layer_acts[l]:
                h = jnp.tanh(h.astype(jnp.bfloat16)) if tanh_bf16 else jnp.tanh(h)
            h = h.astype(jnp.bfloat16)

        if fold_residual:
            # diff = W_last_aug^T @ [h ; x]  -> reconstruction - x in one matmul.
            hx = jnp.concatenate([h, x_bf], axis=0)          # sublane concat (aligned)
            diff = jnp.dot(ws[-1], hx, preferred_element_type=jnp.float32)
        else:
            h = jnp.dot(ws[-1], h, preferred_element_type=jnp.float32)
            if layer_acts[-1]:
                h = jnp.tanh(h)
            x_rep = jnp.concatenate([x_f32] * k1, axis=0)    # (K1*C, t_hw)
            diff = h - x_rep

        red = jnp.abs(diff) if use_l1 else diff * diff       # L1 or L2^2 integrand, f32

        # Per-class reduction as one bf16 MXU matmul (sum_t already folds in `reduction`).
        err = jnp.dot(sum_t, red.astype(jnp.bfloat16),
                      preferred_element_type=jnp.float32)    # (K1, t_hw)
        if clip_len > 0:
            err = jnp.clip(err, -clip_len, clip_len)
        out_ref[b] = err.astype(out_ref.dtype)


# ------------------------------------------------------------------------------------
# Weight fusion (transposed layout: W^T @ x, pixels on lanes)
# ------------------------------------------------------------------------------------
def _fuse_csgrl_weights(layer_weights, reduction, fold_residual,
                        compute_dtype=jnp.bfloat16):
    """Per-class stacked weights (K1, Cin, Cout) -> transposed fused matrices.

    Returns:
      fused : layer 0 is (K1*C1, C) (x shared across classes), deeper layers are
              block-diagonal (K1*Cout, K1*Cin); if fold_residual the last one is
              augmented with -tile(I_C, (K1,1)) so W_aug @ [h ; x] == recon - x.
      sum_t : (K1, K1*C) block-sum matrix scaled by `reduction` (bf16: entries are
              exactly {0, ±gamma} up to bf16 rounding).
    """
    k1, c_in, c1 = layer_weights[0].shape
    fused = [jnp.transpose(layer_weights[0], (0, 2, 1)).reshape(k1 * c1, c_in)]
    for w in layer_weights[1:]:
        _, ci, co = w.shape
        eye = jnp.eye(k1, dtype=w.dtype)
        # M[(k,o),(l,i)] = w[k,i,o] * eye[k,l]
        wbd = jnp.einsum("kio,kl->koli", w, eye).reshape(k1 * co, k1 * ci)
        fused.append(wbd)
    if fold_residual:
        neg_eye_rep = -jnp.tile(jnp.eye(c_in, dtype=fused[-1].dtype), (k1, 1))
        fused[-1] = jnp.concatenate([fused[-1], neg_eye_rep], axis=1)
    fused = [f.astype(compute_dtype) for f in fused]

    c_rec = layer_weights[-1].shape[2]                        # reconstruction width (== c_in)
    sum_t = (jnp.kron(jnp.eye(k1, dtype=jnp.float32),
                      jnp.ones((1, c_rec), jnp.float32)) * float(reduction)
             ).astype(compute_dtype)
    return fused, sum_t


# ------------------------------------------------------------------------------------
# Tile selection (VMEM-aware, generation-safe)
# ------------------------------------------------------------------------------------
def _select_tiles(batch, chan, hw, k1, fused_shapes, vmem_budget_bytes=20 * 1024 * 1024):
    """Pick (tb, t_hw) so double-buffered in/out blocks (with lane/sublane padding)
    plus the live f32 intermediates stay within the default scoped-VMEM budget on
    every generation, including v7x (64 MiB physical / 32 MiB scoped default)."""
    lane, sub = 128, 8
    pad = lambda n, m: -(-n // m) * m
    r_max = max(r for r, _ in fused_shapes)
    w_bytes = 2 * sum(r * c * 2 for r, c in fused_shapes)     # bf16, double-buffered

    def usage(tb, t_hw):
        t_pad = pad(min(t_hw, hw), lane)
        x_blk = tb * pad(chan, sub) * t_pad * 4               # f32 input block
        o_blk = tb * pad(k1, sub) * t_pad * 4                 # f32 output block
        temps = 4 * pad(r_max, sub) * t_pad * 4               # ~4 live f32 intermediates
        return 2 * x_blk + 2 * o_blk + temps + w_bytes

    # Spatial tile: full H*W if small, else a big multiple of 128 (lane-dense stores).
    t_hw = hw if hw <= 2048 else 2048
    if t_hw < hw:
        t_hw = max(lane, (t_hw // lane) * lane)
    while t_hw > lane and usage(1, t_hw) > vmem_budget_bytes:
        t_hw = max(lane, ((t_hw // 2) // lane) * lane)

    # Batch slab: amortize per-grid-step overhead when H*W is small.
    tb = max(1, min(batch, 8, 1024 // max(1, min(t_hw, hw))))
    while tb > 1 and usage(tb, t_hw) > vmem_budget_bytes:
        tb //= 2
    # Keep a few grid steps so v7x's two TensorCores can shard the "parallel" axes.
    while tb > 1 and pl.cdiv(batch, tb) * pl.cdiv(hw, t_hw) < 8:
        tb //= 2
    return tb, t_hw, usage(tb, t_hw)


def _has_bf16_vpu():
    # bf16 tanh helps on v6e / v7x (bf16 VPU/EUP); keep f32 tanh on v5e and older.
    try:
        kind = jax.devices()[0].device_kind.lower()
    except Exception:
        return False
    return ("v6" in kind) or ("v7" in kind)


# ------------------------------------------------------------------------------------
# Wrapper: CSGRLClassifier.forward
# ------------------------------------------------------------------------------------
def csgrl_classifier(x_nchw, layer_weights, layer_acts, reduction,
                     clip_len=100.0, use_l1=False, tanh_bf16=None):
    """CSGRLClassifier.forward: (B, C, H, W) -> logits (B, num_class+1, H, W)."""
    B, C, H, W = x_nchw.shape
    K1 = layer_weights[0].shape[0]
    HW = H * W
    n_layers = len(layer_weights)
    layer_acts = tuple(bool(a) for a in layer_acts)
    if tanh_bf16 is None:
        tanh_bf16 = _has_bf16_vpu()

    # Fold the x-replication/subtraction into the last matmul when the final decode
    # conv has no activation (always true for the AutoEncoder chain in this module).
    fold = (not layer_acts[-1]) and (layer_weights[-1].shape[2] == layer_weights[0].shape[1])
    fused_ws, sum_t = _fuse_csgrl_weights(layer_weights, reduction, fold)

    # NCHW used in place: (B, C, H, W) -> (B, C, H*W) is a free reshape; no transpose,
    # no cast, no pad passes over HBM in the wrapper.
    x3 = x_nchw.reshape(B, C, HW)

    fused_shapes = [tuple(w.shape) for w in fused_ws] + [tuple(sum_t.shape)]
    tb, t_hw, vmem_est = _select_tiles(B, C, HW, K1, fused_shapes)
    grid = (pl.cdiv(B, tb), pl.cdiv(HW, t_hw))

    in_specs = [pl.BlockSpec((tb, C, t_hw), lambda i, j: (i, 0, j))]
    for w in fused_ws:                                        # grid-invariant operands
        in_specs.append(pl.BlockSpec(w.shape, lambda i, j: (0, 0)))
    in_specs.append(pl.BlockSpec(sum_t.shape, lambda i, j: (0, 0)))
    out_spec = pl.BlockSpec((tb, K1, t_hw), lambda i, j: (i, 0, j))

    kernel = functools.partial(
        _csgrl_fused_kernel,
        n_layers=n_layers,
        layer_acts=layer_acts,
        clip_len=float(clip_len),
        use_l1=bool(use_l1),
        fold_residual=fold,
        tanh_bf16=bool(tanh_bf16),
    )

    # Advisory cost estimate so XLA schedules the surrounding graph sensibly.
    n_pix = B * HW
    flops = 2 * n_pix * sum(r * c for r, c in fused_shapes)
    trans = n_pix * sum(fused_shapes[l][0] for l in range(n_layers) if layer_acts[l])
    bytes_accessed = (B * C * HW * 4 + B * K1 * HW * 4
                      + sum(r * c * 2 for r, c in fused_shapes))

    compiler_kwargs = dict(dimension_semantics=("parallel", "parallel"))
    if vmem_est > 28 * 1024 * 1024:        # only raise above the default scoped limit
        compiler_kwargs["vmem_limit_bytes"] = int(vmem_est + (8 << 20))

    logits3 = pl.pallas_call(
        kernel,
        out_shape=jax.ShapeDtypeStruct((B, K1, HW), jnp.float32),
        grid_spec=pltpu.PrefetchScalarGridSpec(
            num_scalar_prefetch=0,
            grid=grid,
            in_specs=in_specs,
            out_specs=out_spec,
        ),
        compiler_params=pltpu.CompilerParams(**compiler_kwargs),
        cost_estimate=pl.CostEstimate(flops=int(flops), transcendentals=int(trans),
                                      bytes_accessed=int(bytes_accessed)),
    )(x3, *fused_ws, sum_t)

    # (B, K1, H*W) -> (B, K1, H, W): free reshape, already NCHW (torch.cat over dim=1).
    return logits3.reshape(B, K1, H, W)


# ------------------------------------------------------------------------------------
# Parameter construction & module-level forward
# ------------------------------------------------------------------------------------
def init_csgrl_params(key, inchannels, num_classes, ae_hidden, ae_latent):
    """Deterministic parameters for CSGRLClassifier: num_classes+1 AutoEncoders.

    Each AE (latent_chan > 0) is a chain of bias-free 1x1 convs:
      encoder convs (tanh) -> latent_conv (tanh) -> latent_deconv (tanh if hidden
      layers exist) -> decode convs in reverse build order; the final conv back to
      `inchannels` has NO activation.
    Returns stacked per-class weights of shape (num_classes+1, Cin, Cout) per layer
    and a parallel list of activation flags.
    """
    assert ae_latent > 0  # TODO(synk): latent_chan == 0 "center" branch not implemented
    chain = []  # (cin, cout, use_tanh), shared structure across all AEs
    c = inchannels
    for h in ae_hidden:
        chain.append((c, h, True))                        # encoder conv + tanh
        c = h
    chain.append((c, ae_latent, True))                    # latent_conv + tanh
    chain.append((ae_latent, c, len(ae_hidden) > 0))      # latent_deconv

    dec = []
    cin = inchannels
    for i, h in enumerate(ae_hidden):
        dec.append((h, cin, i != 0))                      # dcv_i: h -> previous channels
        cin = h
    for spec in reversed(dec):                            # decode_convs were reversed
        chain.append(spec)

    K1 = num_classes + 1
    weights, acts = [], []
    for (ci, co, act) in chain:
        key, sub = jax.random.split(key)
        bound = 1.0 / (ci ** 0.5)                         # torch Conv2d default (k=1, fan_in=ci)
        w = jax.random.uniform(sub, (K1, ci, co), jnp.float32, -bound, bound)
        weights.append(w)
        acts.append(act)
    return weights, acts


def backbone_and_classifier_forward(x, layer_weights, layer_acts, reduction,
                                    feature_only=False, isgen=True, use_l1=False):
    """BackboneAndClassifier.forward(x, feature_only, isgen)."""
    if not isgen:
        # TODO(synk): the Backbone (ResNet / WideResNet) classes live outside the
        # reference snippet (external imports); only the isgen=True path, which feeds
        # backbone features straight to the CSGRL classifier, is implemented.
        raise NotImplementedError("backbone path (isgen=False) not implemented")
    if feature_only:
        return x
    xcls_raw = csgrl_classifier(x, layer_weights, layer_acts, reduction, use_l1=use_l1)
    return x, xcls_raw


# ------------------------------------------------------------------------------------
# Pure-JAX f32 reference (mirrors the PyTorch module) for validation
# ------------------------------------------------------------------------------------
def csgrl_reference(x, layer_weights, layer_acts, reduction, clip_len=100.0, use_l1=False):
    B, C, H, W = x.shape
    k1 = layer_weights[0].shape[0]
    xp = jnp.transpose(x, (0, 2, 3, 1)).reshape(-1, C)
    outs = []
    for k in range(k1):
        h = xp
        for w, act in zip(layer_weights, layer_acts):
            h = h @ w[k]
            if act:
                h = jnp.tanh(h)
        d = h - xp
        e = jnp.sum(jnp.abs(d) if use_l1 else d * d, axis=-1) * reduction
        if clip_len > 0:
            e = jnp.clip(e, -clip_len, clip_len)
        outs.append(e)
    logits = jnp.stack(outs, axis=-1)
    return logits.reshape(B, H, W, k1).transpose(0, 3, 1, 2)


if __name__ == "__main__":
    key = jax.random.PRNGKey(0)

    # Small, module-consistent shapes: backbone feature map (B, output_dim, H, W)
    B, C, Hs, Ws = 2, 32, 4, 4
    num_classes = 4
    ae_hidden = [16]
    ae_latent = 8
    gamma = 0.1
    reduction = -1.0 * gamma          # config['model'] == 'csgrl'
    use_l1 = False                    # config['error_measure'] == 'L2'

    kx, kw = jax.random.split(key)
    feats = jax.random.normal(kx, (B, C, Hs, Ws), jnp.float32)
    weights, acts = init_csgrl_params(kw, C, num_classes, ae_hidden, ae_latent)

    x_out, logits = backbone_and_classifier_forward(
        feats, weights, acts, reduction, feature_only=False, isgen=True, use_l1=use_l1)
    jax.block_until_ready((x_out, logits))

    assert x_out.shape == (B, C, Hs, Ws)
    assert logits.shape == (B, num_classes + 1, Hs, Ws)
    assert bool(jnp.all(jnp.isfinite(logits)))
    assert bool(jnp.all(jnp.abs(logits) <= 100.0))

    # Validate bf16-MXU kernel against the f32 reference with an explicit tolerance.
    ref = csgrl_reference(feats, weights, acts, reduction, use_l1=use_l1)
    max_err = float(jnp.max(jnp.abs(logits - ref)))
    tol = 0.05 * (float(jnp.max(jnp.abs(ref))) + 1.0)
    assert max_err < tol, f"kernel vs f32 reference mismatch: {max_err:.4f} >= {tol:.4f}"

    print("KERNEL_OK")
</pallas_src>

<mosaic_0001>
module attributes {stable_mosaic.version = 11 : i64} {
  func.func @_csgrl_fused_kernel(%arg0: i32, %arg1: i32, %arg2: memref<1x32x16xf32, #tpu.memory_space<vmem>>, %arg3: memref<80x32xbf16, #tpu.memory_space<vmem>>, %arg4: memref<40x80xbf16, #tpu.memory_space<vmem>>, %arg5: memref<80x40xbf16, #tpu.memory_space<vmem>>, %arg6: memref<160x112xbf16, #tpu.memory_space<vmem>>, %arg7: memref<5x160xbf16, #tpu.memory_space<vmem>>, %arg8: memref<1x5x16xf32, #tpu.memory_space<vmem>>) attributes {dimension_semantics = [#tpu.dimension_semantics<parallel>, #tpu.dimension_semantics<parallel>], iteration_bounds = array<i64: 2, 1>, scalar_prefetch = 0 : i64, scratch_operands = 0 : i64, tpu.core_type = #tpu.core_type<tc>, window_params = [{transform_indices = @transform_0, window_bounds = array<i64: 1, 32, 16>}, {pipeline_mode = #tpu.pipeline_mode<synchronous>, transform_indices = @transform_1, window_bounds = array<i64: 80, 32>}, {pipeline_mode = #tpu.pipeline_mode<synchronous>, transform_indices = @transform_2, window_bounds = array<i64: 40, 80>}, {pipeline_mode = #tpu.pipeline_mode<synchronous>, transform_indices = @transform_3, window_bounds = array<i64: 80, 40>}, {pipeline_mode = #tpu.pipeline_mode<synchronous>, transform_indices = @transform_4, window_bounds = array<i64: 160, 112>}, {pipeline_mode = #tpu.pipeline_mode<synchronous>, transform_indices = @transform_5, window_bounds = array<i64: 5, 160>}, {transform_indices = @transform_6, window_bounds = array<i64: 1, 5, 16>}]} {
    %c0 = arith.constant 0 : index
    %c0_0 = arith.constant 0 : index
    %0 = vector.load %arg3[%c0, %c0_0] : memref<80x32xbf16, #tpu.memory_space<vmem>>, vector<80x32xbf16>
    %c0_1 = arith.constant 0 : index
    %c0_2 = arith.constant 0 : index
    %1 = vector.load %arg4[%c0_1, %c0_2] : memref<40x80xbf16, #tpu.memory_space<vmem>>, vector<40x80xbf16>
    %c0_3 = arith.constant 0 : index
    %c0_4 = arith.constant 0 : index
    %2 = vector.load %arg5[%c0_3, %c0_4] : memref<80x40xbf16, #tpu.memory_space<vmem>>, vector<80x40xbf16>
    %c0_5 = arith.constant 0 : index
    %c0_6 = arith.constant 0 : index
    %3 = vector.load %arg6[%c0_5, %c0_6] : memref<160x112xbf16, #tpu.memory_space<vmem>>, vector<160x112xbf16>
    %c0_7 = arith.constant 0 : index
    %c0_8 = arith.constant 0 : index
    %4 = vector.load %arg7[%c0_7, %c0_8] : memref<5x160xbf16, #tpu.memory_space<vmem>>, vector<5x160xbf16>
    %c0_9 = arith.constant 0 : index
    %c0_10 = arith.constant 0 : index
    %c0_11 = arith.constant 0 : index
    %5 = vector.load %arg2[%c0_9, %c0_10, %c0_11] : memref<1x32x16xf32, #tpu.memory_space<vmem>>, vector<1x32x16xf32>
    %6 = vector.shape_cast %5 : vector<1x32x16xf32> to vector<32x16xf32>
    %7 = arith.truncf %6 : vector<32x16xf32> to vector<32x16xbf16>
    %cst = arith.constant dense<0.000000e+00> : vector<80x16xf32>
    %8 = tpu.matmul %0, %7, %cst {dimension_numbers = #tpu.dot_dimension_numbers<[1], [0], [0], [1], [0, 0, 1, 1], [], []>} : vector<80x32xbf16>, vector<32x16xbf16>, vector<80x16xf32> -> vector<80x16xf32>
    %9 = math.tanh %8 : vector<80x16xf32>
    %10 = arith.truncf %9 : vector<80x16xf32> to vector<80x16xbf16>
    %cst_12 = arith.constant dense<0.000000e+00> : vector<40x16xf32>
    %11 = tpu.matmul %1, %10, %cst_12 {dimension_numbers = #tpu.dot_dimension_numbers<[1], [0], [0], [1], [0, 0, 1, 1], [], []>} : vector<40x80xbf16>, vector<80x16xbf16>, vector<40x16xf32> -> vector<40x16xf32>
    %12 = math.tanh %11 : vector<40x16xf32>
    %13 = arith.truncf %12 : vector<40x16xf32> to vector<40x16xbf16>
    %cst_13 = arith.constant dense<0.000000e+00> : vector<80x16xf32>
    %14 = tpu.matmul %2, %13, %cst_13 {dimension_numbers = #tpu.dot_dimension_numbers<[1], [0], [0], [1], [0, 0, 1, 1], [], []>} : vector<80x40xbf16>, vector<40x16xbf16>, vector<80x16xf32> -> vector<80x16xf32>
    %15 = math.tanh %14 : vector<80x16xf32>
    %16 = arith.truncf %15 : vector<80x16xf32> to vector<80x16xbf16>
    %17 = tpu.concatenate %16, %7 in 0 : vector<80x16xbf16>, vector<32x16xbf16> -> vector<112x16xbf16>
    %cst_14 = arith.constant dense<0.000000e+00> : vector<160x16xf32>
    %18 = tpu.matmul %3, %17, %cst_14 {dimension_numbers = #tpu.dot_dimension_numbers<[1], [0], [0], [1], [0, 0, 1, 1], [], []>} : vector<160x112xbf16>, vector<112x16xbf16>, vector<160x16xf32> -> vector<160x16xf32>
    %19 = arith.mulf %18, %18 : vector<160x16xf32>
    %20 = arith.truncf %19 : vector<160x16xf32> to vector<160x16xbf16>
    %cst_15 = arith.constant dense<0.000000e+00> : vector<5x16xf32>
    %21 = tpu.matmul %4, %20, %cst_15 {dimension_numbers = #tpu.dot_dimension_numbers<[1], [0], [0], [1], [0, 0, 1, 1], [], []>} : vector<5x160xbf16>, vector<160x16xbf16>, vector<5x16xf32> -> vector<5x16xf32>
    %cst_16 = arith.constant -1.000000e+02 : f32
    %cst_17 = arith.constant 1.000000e+02 : f32
    %22 = vector.broadcast %cst_16 : f32 to vector<5x16xf32>
    %23 = arith.maximumf %22, %21 : vector<5x16xf32>
    %24 = vector.broadcast %cst_17 : f32 to vector<5x16xf32>
    %25 = arith.minimumf %24, %23 : vector<5x16xf32>
    %c0_18 = arith.constant 0 : index
    %c0_19 = arith.constant 0 : index
    %c0_20 = arith.constant 0 : index
    %26 = vector.load %arg8[%c0_18, %c0_19, %c0_20] : memref<1x5x16xf32, #tpu.memory_space<vmem>>, vector<1x5x16xf32>
    %27 = vector.shape_cast %26 : vector<1x5x16xf32> to vector<5x16xf32>
    %28 = vector.shape_cast %25 : vector<5x16xf32> to vector<1x5x16xf32>
    tpu.vector_store %arg8[%c0_18, %c0_19, %c0_20], %28 {strides = array<i32>} : memref<1x5x16xf32, #tpu.memory_space<vmem>>, vector<1x5x16xf32>,
    return
  }
  func.func @transform_0(%arg0: i32, %arg1: i32) -> (i32, i32, i32) {
    %c0_i32 = arith.constant 0 : i32
    %c0_i32_0 = arith.constant 0 : i32
    return %arg0, %c0_i32, %arg1 : i32, i32, i32
  }
  func.func @transform_1(%arg0: i32, %arg1: i32) -> (i32, i32) {
    %c0_i32 = arith.constant 0 : i32
    %c0_i32_0 = arith.constant 0 : i32
    %c0_i32_1 = arith.constant 0 : i32
    return %c0_i32, %c0_i32_0 : i32, i32
  }
  func.func @transform_2(%arg0: i32, %arg1: i32) -> (i32, i32) {
    %c0_i32 = arith.constant 0 : i32
    %c0_i32_0 = arith.constant 0 : i32
    %c0_i32_1 = arith.constant 0 : i32
    return %c0_i32, %c0_i32_0 : i32, i32
  }
  func.func @transform_3(%arg0: i32, %arg1: i32) -> (i32, i32) {
    %c0_i32 = arith.constant 0 : i32
    %c0_i32_0 = arith.constant 0 : i32
    %c0_i32_1 = arith.constant 0 : i32
    return %c0_i32, %c0_i32_0 : i32, i32
  }
  func.func @transform_4(%arg0: i32, %arg1: i32) -> (i32, i32) {
    %c0_i32 = arith.constant 0 : i32
    %c0_i32_0 = arith.constant 0 : i32
    %c0_i32_1 = arith.constant 0 : i32
    return %c0_i32, %c0_i32_0 : i32, i32
  }
  func.func @transform_5(%arg0: i32, %arg1: i32) -> (i32, i32) {
    %c0_i32 = arith.constant 0 : i32
    %c0_i32_0 = arith.constant 0 : i32
    %c0_i32_1 = arith.constant 0 : i32
    return %c0_i32, %c0_i32_0 : i32, i32
  }
  func.func @transform_6(%arg0: i32, %arg1: i32) -> (i32, i32, i32) {
    %c0_i32 = arith.constant 0 : i32
    %c0_i32_0 = arith.constant 0 : i32
    return %arg0, %c0_i32, %arg1 : i32, i32, i32
  }
}

</mosaic_0001>

<bundles_post_ra>
// kernel: tpu_custom_call.1
= control target key start
LH: loop header
LB: loop body
LE: loop exit
PB: predicated region body
PF: predicated region fallthrough
CT: control target
= control target key end

     0   :  { %s1408_s21 = smov 0   ;;  %s1410_s22 = smov 0   ;;  %s1595_s0 = inlined_call_operand.vmem [shape: f32[2,32,16], index: 0, kind: input, shape index: {}]   ;;  %s1596_s1 = inlined_call_operand.vmem [shape: bf16[80,32], index: 1, kind: input, shape index: {}]   ;;  %s1597_s2 = inlined_call_operand.vmem [shape: bf16[40,80], index: 2, kind: input, shape index: {}]   ;;  %s1598_s3 = inlined_call_operand.vmem [shape: bf16[80,40], index: 3, kind: input, shape index: {}]   ;;  %s1599_s4 = inlined_call_operand.vmem [shape: bf16[160,112], index: 4, kind: input, shape index: {}]   ;;  %s1600_s5 = inlined_call_operand.vmem [shape: bf16[5,160], index: 5, kind: input, shape index: {}]   ;;  %s1601_s6 = inlined_call_operand.vmem [shape: f32[2,5,16], index: 6, kind: output, shape index: {}]  }
   0x1   :  { %s1412_s23 = smov 0  }
   0x2 LB: > { %s28_s24 = sadd.s32 1, %s1364_s22  ;;  %p1041_p0 = scmp.ge.s32.totalorder %s1368_s23, 1  ;;  %s1368_s23 = sphi %s1412_s23, %s16_s23   ;;  %s1364_s22 = sphi %s1410_s22, %s1603_s22   ;;  %s1360_s21 = sphi %s1408_s21, %s1602_s21  }
   0x3   : > { %p30_p1 = scmp.ge.s32.totalorder %s28_s24, 2  ;;  %p231_p2 = scmp.lt.s32.totalorder %s1368_s23, 3 }
   0x5   : > { %s1605_s24 = smov (%p30_p1, %s28_s24), 0  ;;  %p232_p3 = pnand %p1041_p0, %p231_p2 }
   0x6   : > { %p266_p4 = scmp.lt.s32.totalorder (!%p232_p3), %s1360_s21, 1  ;;  %v1370_v0 = vmov (!%p232_p3), 0.0   ;;  %vm1371_vm0 = vmmov (!%p232_p3), 0   ;;  %vm359_vm1 = vcmask (!%p232_p3), 261120   ;;  %v1271_v7 = vld [vmem:[%s1596_s1] sm:$0xff] (!%p232_p3)   ;;  %v1272_v8 = vld [vmem:[%s1596_s1 + $0x8] sm:$0xff] (!%p232_p3)  }
   0x7   : > { %235 = sbr.rel (%p232_p3) target bundleno = 1278 (0x4fe), region = 44  ;;  %1138 = vmatprep.subr.bf16.mxu0 (!%p232_p3), %v1370_v0  ;;  %1142 = vmatprep.mubr.msk.bf16.mxu0 (!%p232_p3), %vm1371_vm0, %v1370_v0  ;;  %v1273_v9 = vld [vmem:[%s1596_s1 + $0x10] sm:$0xff] (!%p232_p3)   ;;  %v1274_v10 = vld [vmem:[%s1596_s1 + $0x18] sm:$0xff] (!%p232_p3)   ;;  %v1275_v11 = vld [vmem:[%s1596_s1 + $0x20] sm:$0xff] (!%p232_p3)   ;;  %vm476_vm2 = vcmask (!%p232_p3), 654336   ;;  %vm591_vm3 = vcmask (!%p232_p3), 1043456  }
   0x8   : > { %1162 = vmatprep.subr.bf16.mxu1 (!%p232_p3), %v1370_v0  ;;  %1172 = vmatprep.mubr.msk.bf16.mxu1 (!%p232_p3), %vm1371_vm0, %v1370_v0  ;;  %v1276_v47 = vld [vmem:[%s1597_s2] sm:$0xff] (!%p232_p3)   ;;  %v1277_v48 = vld [vmem:[%s1597_s2 + $0x8] sm:$0xff] (!%p232_p3)   ;;  %v1278_v49 = vld [vmem:[%s1597_s2 + $0x10] ss:$0 sps:$4 sm:$0xff] (!%p232_p3)   ;;  %vm575_vm4 = vcmask (!%p232_p3), 326656   ;;  %vm733_vm5 = vcmask (!%p232_p3), 916480  }
   0x9   : > { %vm958_vm6 = vcmask (!%p232_p3), 126976  }
   0xe   : > { %s1607_s21 = smov (!%p266_p4, %s1360_s21), 1 }
   0xf   : > { %s1097_s25 = sshll.u32 %s1607_s21, 5  ;;  %s1044_s13 = sshll.u32 %s1607_s21, 3 }
  0x10   : > { %s273_s28 = scalar_lea.vmem %s1595_s0, %s1097_s25  ;;  %s280_s16 = scalar_lea.vmem %s1601_s6, %s1044_s13 }
  0x11   : > { %v328_v1 = vld [vmem:[%s273_s28] sm:$0xff]  ;;  %v329_v2 = vld [vmem:[%s273_s28 + $0x8] sm:$0xff]  ;;  %v330_v3 = vld [vmem:[%s273_s28 + $0x10] sm:$0xff] }
  0x12   : > { %v1438_v4 = vpack.c.bf16 %v329_v2, %v328_v1  ;;  %v331_v5 = vld [vmem:[%s273_s28 + $0x18] sm:$0xff] }
  0x13   : > { %v1441_v6 = vpack.c.bf16 %v331_v5, %v330_v3 }
  0x14   : > { %1139 = vmatpush3.bf16.msra.mxu0 %v1438_v4 }
  0x15   : > { %1140 = vmatprep.subr.bf16.mxu0 %v1370_v0 }
  0x18   : > { %1141 = vmatpush3.bf16.msra.mxu0 %v1441_v6 }
  0x1b   : > { %1143 = vmatmul.mubr.msk.bf16.vlgmr.msra.gmra.mrb[0].mxu0 %vm359_vm1, %v1271_v7 }
  0x1c   : > { %1146 = vmatprep.mubr.msk.bf16.mxu0 %vm1371_vm0, %v1370_v0 }
  0x23   : > { %1147 = vmatmul.mubr.msk.bf16.gmra.mrb[4].mxu0 %vm359_vm1, %v1272_v8 }
  0x24   : > { %1150 = vmatprep.mubr.msk.bf16.mxu0 %vm1371_vm0, %v1370_v0 }
  0x2b   : > { %1151 = vmatmul.mubr.msk.bf16.gmra.mrb[8].mxu0 %vm359_vm1, %v1273_v9 }
  0x2c   : > { %1154 = vmatprep.mubr.msk.bf16.mxu0 %vm1371_vm0, %v1370_v0 }
  0x33   : > { %1155 = vmatmul.mubr.msk.bf16.gmra.mrb[12].mxu0 %vm359_vm1, %v1274_v10  ;;  %v1279_v10 = vld [vmem:[%s1598_s3] sm:$0xff]  }
  0x34   : > { %1158 = vmatprep.mubr.msk.bf16.mxu0 %vm1371_vm0, %v1370_v0 }
  0x3b   : > { %1159 = vmatmul.mubr.msk.bf16.gmra.mrb[16].mxu0 %vm359_vm1, %v1275_v11  ;;  %v1280_v11 = vld [vmem:[%s1598_s3 + $0x8] sm:$0xff]  }
  0xee   : > { %v409_v12 = vpop.f32.mrb[0].mxu0 }
  0xef   : > { %v1144_v13 = vpop.f32.mrb[1].mxu0  ;;  %1296 = vtanh.f32 %v409_v12  ;;  %v1281_v12 = vld [vmem:[%s1598_s3 + $0x10] sm:$0xff]  }
  0xf0   : > { %v412_v14 = vpop.f32.mrb[2].mxu0  ;;  %v1282_v13 = vld [vmem:[%s1598_s3 + $0x18] sm:$0xff]  }
  0xf1   : > { %1298 = vtanh.f32 %v412_v14  ;;  %v1145_v15 = vpop.f32.mrb[3].mxu0  ;;  %v1283_v14 = vld [vmem:[%s1598_s3 + $0x20] sm:$0xff]  }
  0xf2   : > { %v1284_v15 = vld [vmem:[%s1599_s4] sm:$0xff]  }
  0xf3   : > { %1224 = vmatprep.mubr.msk.bf16.mxu0 %vm733_vm5, %v1284_v15 }
  0xf6   : > { %v417_v16 = vpop.f32.mrb[4].mxu0 }
  0xf7   : > { %v1148_v17 = vpop.f32.mrb[5].mxu0  ;;  %1300 = vtanh.f32 %v417_v16 }
  0xf8   : > { %v420_v18 = vpop.f32.mrb[6].mxu0 }
  0xf9   : > { %1302 = vtanh.f32 %v420_v18  ;;  %v1149_v19 = vpop.f32.mrb[7].mxu0  ;;  %v1297_v20 = vpop.eup %1296 }
  0xfb   : > { %v1299_v21 = vpop.eup %1298 }
  0xfc   : > { %v458_v22 = vpack.c.bf16 %v1299_v21, %v1297_v20 }
  0xfe   : > { %v425_v23 = vpop.f32.mrb[8].mxu0  ;;  %1163 = vmatpush3.bf16.msra.mxu1 %v458_v22 }
  0xff   : > { %v1152_v24 = vpop.f32.mrb[9].mxu0  ;;  %1164 = vmatprep.subr.bf16.mxu1 %v1370_v0  ;;  %1304 = vtanh.f32 %v425_v23 }
 0x100   : > { %v428_v25 = vpop.f32.mrb[10].mxu0 }
 0x101   : > { %1306 = vtanh.f32 %v428_v25  ;;  %v1153_v26 = vpop.f32.mrb[11].mxu0  ;;  %v1301_v27 = vpop.eup %1300 }
 0x103   : > { %v1303_v28 = vpop.eup %1302 }
 0x104   : > { %v459_v29 = vpack.c.bf16 %v1303_v28, %v1301_v27 }
 0x106   : > { %v433_v30 = vpop.f32.mrb[12].mxu0  ;;  %1165 = vmatpush3.bf16.msra.mxu1 %v459_v29 }
 0x107   : > { %v1156_v31 = vpop.f32.mrb[13].mxu0  ;;  %1166 = vmatprep.subr.bf16.mxu1 %v1370_v0  ;;  %1308 = vtanh.f32 %v433_v30 }
 0x108   : > { %v436_v32 = vpop.f32.mrb[14].mxu0 }
 0x109   : > { %1310 = vtanh.f32 %v436_v32  ;;  %v1157_v33 = vpop.f32.mrb[15].mxu0  ;;  %v1305_v34 = vpop.eup %1304 }
 0x10b   : > { %v1307_v35 = vpop.eup %1306 }
 0x10c   : > { %v460_v36 = vpack.c.bf16 %v1307_v35, %v1305_v34 }
 0x10e   : > { %v441_v37 = vpop.f32.mrb[16].mxu0  ;;  %1167 = vmatpush3.bf16.msra.mxu1 %v460_v36 }
 0x10f   : > { %v1160_v38 = vpop.f32.mrb[17].mxu0  ;;  %1168 = vmatprep.subr.bf16.mxu1 %v1370_v0  ;;  %1312 = vtanh.f32 %v441_v37 }
 0x110   : > { %v444_v39 = vpop.f32.mrb[18].mxu0 }
 0x111   : > { %1314 = vtanh.f32 %v444_v39  ;;  %v1161_v40 = vpop.f32.mrb[19].mxu0  ;;  %v1309_v41 = vpop.eup %1308 }
 0x113   : > { %v1311_v42 = vpop.eup %1310 }
 0x114   : > { %v461_v43 = vpack.c.bf16 %v1311_v42, %v1309_v41 }
 0x116   : > { %1169 = vmatpush3.bf16.msra.mxu1 %v461_v43 }
 0x117   : > { %1170 = vmatprep.subr.bf16.mxu1 %v1370_v0 }
 0x119   : > { %v1313_v44 = vpop.eup %1312 }
 0x11b   : > { %v1315_v45 = vpop.eup %1314 }
 0x11c   : > { %v462_v46 = vpack.c.bf16 %v1315_v45, %v1313_v44 }
 0x11e   : > { %1171 = vmatpush3.bf16.msra.mxu1 %v462_v46 }
 0x11f   : > { %1184 = vmatprep.subr.bf16.mxu1 %v1370_v0 }
 0x121   : > { %1173 = vmatmul.mubr.msk.bf16.vlgmr.msra.gmra.mrb[0].mxu1 %vm476_vm2, %v1276_v47 }
 0x122   : > { %1176 = vmatprep.mubr.msk.bf16.mxu1 %vm1371_vm0, %v1370_v0 }
 0x129   : > { %1177 = vmatmul.mubr.msk.bf16.gmra.mrb[4].mxu1 %vm476_vm2, %v1277_v48 }
 0x12a   : > { %1180 = vmatprep.mubr.msk.bf16.mxu1 %vm1371_vm0, %v1370_v0 }
 0x131   : > { %1181 = vmatmul.mubr.msk.bf16.gmra.mrb[8].mxu1 %vm476_vm2, %v1278_v49 }
 0x132   : > { %1190 = vmatprep.mubr.msk.bf16.mxu1 %vm1371_vm0, %v1370_v0 }
 0x1f4   : > { %v520_v50 = vpop.f32.mrb[0].mxu1 }
 0x1f5   : > { %v1174_v51 = vpop.f32.mrb[1].mxu1  ;;  %1316 = vtanh.f32 %v520_v50  ;;  %v1285_v50 = vld [vmem:[%s1599_s4 + $0x8] sm:$0xff]  }
 0x1f6   : > { %v523_v52 = vpop.f32.mrb[2].mxu1  ;;  %v1286_v51 = vld [vmem:[%s1599_s4 + $0x10] sm:$0xff]  }
 0x1f7   : > { %1318 = vtanh.f32 %v523_v52  ;;  %v1175_v53 = vpop.f32.mrb[3].mxu1  ;;  %v1288_v52 = vld [vmem:[%s1599_s4 + $0x20] sm:$0xff]  }
 0x1f8   : > { %v1290_v53 = vld [vmem:[%s1599_s4 + $0x30] sm:$0xff]  }
 0x1fc   : > { %v528_v54 = vpop.f32.mrb[4].mxu1 }
 0x1fd   : > { %v1178_v55 = vpop.f32.mrb[5].mxu1  ;;  %1320 = vtanh.f32 %v528_v54  ;;  %v1291_v54 = vld [vmem:[%s1599_s4 + $0x38] sm:$0xff]  }
 0x1fe   : > { %v531_v56 = vpop.f32.mrb[6].mxu1  ;;  %v1292_v55 = vld [vmem:[%s1599_s4 + $0x40] sm:$0xff]  }
 0x1ff   : > { %1322 = vtanh.f32 %v531_v56  ;;  %v1179_v57 = vpop.f32.mrb[7].mxu1  ;;  %v1317_v58 = vpop.eup %1316  ;;  %v1293_v56 = vld [vmem:[%s1599_s4 + $0x48] sm:$0xff]  }
 0x200   : > { %v1372_v57 = vmov 0  }
 0x201   : > { %v1319_v59 = vpop.eup %1318 }
 0x202   : > { %v547_v60 = vpack.c.bf16 %v1319_v59, %v1317_v58  ;;  %v1566_v58 = vld [vmem:[%s1600_s5] sm:$0x77] }
 0x203   : > { %v1092_v59 = vcombine.high %v1566_v58, %v1566_v58 }
 0x204   : > { %v536_v61 = vpop.f32.mrb[8].mxu1  ;;  %1185 = vmatpush3.bf16.msra.mxu1 %v547_v60 }
 0x205   : > { %1324 = vtanh.f32 %v536_v61  ;;  %v1182_v62 = vpop.f32.mrb[9].mxu1  ;;  %1186 = vmatprep.subr.bf16.mxu1 %v1370_v0 }
 0x206   : > { %v539_v63 = vpop.f32.mrb[10].mxu1 }
 0x207   : > { %v1183_v1 = vpop.f32.mrb[11].mxu1  ;;  %v1321_v2 = vpop.eup %1320 }
 0x209   : > { %v1323_v3 = vpop.eup %1322 }
 0x20a   : > { %v548_v5 = vpack.c.bf16 %v1323_v3, %v1321_v2 }
 0x20c   : > { %1187 = vmatpush3.bf16.msra.mxu1 %v548_v5 }
 0x20d   : > { %1188 = vmatprep.subr.bf16.mxu1 %v1370_v0 }
 0x20f   : > { %v1325_v7 = vpop.eup %1324 }
 0x210   : > { %v549_v8 = vpack.c.bf16 %v1325_v7, %v1325_v7 }
 0x212   : > { %v593_v9 = vsel %vm591_vm3, %v549_v8, 0 }
 0x213   : > { %1189 = vmatpush3.bf16.msra.mxu1 %v593_v9 }
 0x214   : > { %916 = vmatprep.subr.bf16.mxu1 %v1372_v57 }
 0x216   : > { %1191 = vmatmul.mubr.msk.bf16.vlgmr.msra.gmra.mrb[12].mxu1 %vm575_vm4, %v1279_v10 }
 0x217   : > { %1194 = vmatprep.mubr.msk.bf16.mxu1 %vm1371_vm0, %v1370_v0 }
 0x21e   : > { %1195 = vmatmul.mubr.msk.bf16.gmra.mrb[16].mxu1 %vm575_vm4, %v1280_v11 }
 0x21f   : > { %1198 = vmatprep.mubr.msk.bf16.mxu1 %vm1371_vm0, %v1370_v0 }
 0x226   : > { %1199 = vmatmul.mubr.msk.bf16.gmra.mrb[20].mxu1 %vm575_vm4, %v1281_v12 }
 0x227   : > { %1202 = vmatprep.mubr.msk.bf16.mxu1 %vm1371_vm0, %v1370_v0 }
 0x22e   : > { %1203 = vmatmul.mubr.msk.bf16.gmra.mrb[24].mxu1 %vm575_vm4, %v1282_v13 }
 0x22f   : > { %1206 = vmatprep.mubr.msk.bf16.mxu1 %vm1371_vm0, %v1370_v0 }
 0x236   : > { %1207 = vmatmul.mubr.msk.bf16.gmra.mrb[28].mxu1 %vm575_vm4, %v1283_v14 }
 0x237   : > { %1093 = vmatprep.mubr.msk.bf16.mxu1 %vm359_vm1, %v1092_v59 }
 0x2e9   : > { %v629_v16 = vpop.f32.mrb[12].mxu1 }
 0x2ea   : > { %v1192_v17 = vpop.f32.mrb[13].mxu1  ;;  %1326 = vtanh.f32 %v629_v16 }
 0x2eb   : > { %v632_v18 = vpop.f32.mrb[14].mxu1 }
 0x2ec   : > { %1328 = vtanh.f32 %v632_v18  ;;  %v1193_v19 = vpop.f32.mrb[15].mxu1 }
 0x2f1   : > { %v637_v20 = vpop.f32.mrb[16].mxu1 }
 0x2f2   : > { %v1196_v0 = vpop.f32.mrb[17].mxu1  ;;  %1330 = vtanh.f32 %v637_v20 }
 0x2f3   : > { %v640_v21 = vpop.f32.mrb[18].mxu1 }
 0x2f4   : > { %1332 = vtanh.f32 %v640_v21  ;;  %v1197_v22 = vpop.f32.mrb[19].mxu1  ;;  %v1327_v23 = vpop.eup %1326 }
 0x2f6   : > { %v1329_v24 = vpop.eup %1328 }
 0x2f7   : > { %v678_v25 = vpack.c.bf16 %v1329_v24, %v1327_v23 }
 0x2f9   : > { %v645_v26 = vpop.f32.mrb[20].mxu1  ;;  %1210 = vmatprep.subr.bf16.mxu0 %v678_v25 }
 0x2fa   : > { %v1200_v27 = vpop.f32.mrb[21].mxu1  ;;  %1211 = vmatpush3.bf16.msra.mxu0 %v678_v25  ;;  %1334 = vtanh.f32 %v645_v26 }
 0x2fb   : > { %v648_v28 = vpop.f32.mrb[22].mxu1 }
 0x2fc   : > { %1336 = vtanh.f32 %v648_v28  ;;  %v1201_v29 = vpop.f32.mrb[23].mxu1  ;;  %v1331_v30 = vpop.eup %1330 }
 0x2fe   : > { %v1333_v31 = vpop.eup %1332 }
 0x2ff   : > { %v679_v32 = vpack.c.bf16 %v1333_v31, %v1331_v30 }
 0x301   : > { %v653_v33 = vpop.f32.mrb[24].mxu1  ;;  %1212 = vmatprep.subr.bf16.mxu0 %v679_v32 }
 0x302   : > { %v1204_v34 = vpop.f32.mrb[25].mxu1  ;;  %1213 = vmatpush3.bf16.msra.mxu0 %v679_v32  ;;  %1338 = vtanh.f32 %v653_v33 }
 0x303   : > { %v656_v35 = vpop.f32.mrb[26].mxu1 }
 0x304   : > { %1340 = vtanh.f32 %v656_v35  ;;  %v1205_v36 = vpop.f32.mrb[27].mxu1  ;;  %v1335_v37 = vpop.eup %1334 }
 0x306   : > { %v1337_v38 = vpop.eup %1336 }
 0x307   : > { %v680_v39 = vpack.c.bf16 %v1337_v38, %v1335_v37 }
 0x309   : > { %v661_v40 = vpop.f32.mrb[28].mxu1  ;;  %1214 = vmatprep.subr.bf16.mxu0 %v680_v39 }
 0x30a   : > { %v1208_v41 = vpop.f32.mrb[29].mxu1  ;;  %1215 = vmatpush3.bf16.msra.mxu0 %v680_v39  ;;  %1342 = vtanh.f32 %v661_v40 }
 0x30b   : > { %v664_v42 = vpop.f32.mrb[30].mxu1 }
 0x30c   : > { %1344 = vtanh.f32 %v664_v42  ;;  %v1209_v43 = vpop.f32.mrb[31].mxu1  ;;  %v1339_v44 = vpop.eup %1338 }
 0x30e   : > { %v1341_v45 = vpop.eup %1340 }
 0x30f   : > { %v681_v46 = vpack.c.bf16 %v1341_v45, %v1339_v44 }
 0x311   : > { %1216 = vmatprep.subr.bf16.mxu0 %v681_v46 }
 0x312   : > { %1217 = vmatpush3.bf16.msra.mxu0 %v681_v46 }
 0x314   : > { %v1343_v47 = vpop.eup %1342 }
 0x316   : > { %v1345_v48 = vpop.eup %1344 }
 0x317   : > { %v682_v49 = vpack.c.bf16 %v1345_v48, %v1343_v47  ;;  %v1091_v48 = vcombine.low %v1566_v58, %v1566_v58 }
 0x319   : > { %1218 = vmatprep.subr.bf16.mxu0 %v682_v49 }
 0x31a   : > { %1219 = vmatpush3.bf16.msra.mxu0 %v682_v49 }
 0x31b   : > { %1220 = vmatprep.subr.bf16.mxu0 %v1438_v4 }
 0x31e   : > { %1221 = vmatpush3.bf16.msra.mxu0 %v1438_v4  ;;  %v1287_v4 = vld [vmem:[%s1599_s4 + $0x18] sm:$0xff]  }
 0x31f   : > { %1222 = vmatprep.subr.bf16.mxu0 %v1441_v6 }
 0x322   : > { %1223 = vmatpush3.bf16.msra.mxu0 %v1441_v6  ;;  %v1289_v6 = vld [vmem:[%s1599_s4 + $0x28] sm:$0xff]  }
 0x325   : > { %1225 = vmatmul.mubr.msk.bf16.vlgmr.msra.gmra.mrb[20].mxu0 %vm733_vm5, %v1285_v50 }
 0x326   : > { %1228 = vmatprep.mubr.msk.bf16.mxu0 %vm733_vm5, %v1286_v51 }
 0x32d   : > { %1229 = vmatmul.mubr.msk.bf16.gmra.mrb[24].mxu0 %vm733_vm5, %v1287_v4 }
 0x32e   : > { %1232 = vmatprep.mubr.msk.bf16.mxu0 %vm733_vm5, %v1288_v52 }
 0x335   : > { %1233 = vmatmul.mubr.msk.bf16.gmra.mrb[28].mxu0 %vm733_vm5, %v1289_v6 }
 0x336   : > { %1236 = vmatprep.mubr.msk.bf16.mxu0 %vm733_vm5, %v1290_v53 }
 0x33d   : > { %1237 = vmatmul.mubr.msk.bf16.gmra.mrb[32].mxu0 %vm733_vm5, %v1291_v54 }
 0x33e   : > { %1240 = vmatprep.mubr.msk.bf16.mxu0 %vm733_vm5, %v1292_v55 }
 0x345   : > { %1241 = vmatmul.mubr.msk.bf16.gmra.mrb[36].mxu0 %vm733_vm5, %v1293_v56 }
 0x3f8   : > { %v1226_v60 = vpop.f32.mrb[20].mxu0 }
 0x3f9   : > { %v798_v61 = vpop.f32.mrb[21].mxu0  ;;  %v879_v63 = vmul.f32 %v1226_v60, %v1226_v60 }
 0x3fa   : > { %v1227_v62 = vpop.f32.mrb[22].mxu0  ;;  %v877_v3 = vmul.f32 %v798_v61, %v798_v61 }
 0x3fb   : > { %v880_v1 = vmul.f32 %v1227_v62, %v1227_v62  ;;  %v801_v2 = vpop.f32.mrb[23].mxu0 }
 0x3fc   : > { %v878_v5 = vmul.f32 %v801_v2, %v801_v2 }
 0x3fd   : > { %v898_v7 = vpack.c.bf16 %v880_v1, %v879_v63 }
 0x3fe   : > { %v897_v8 = vpack.c.bf16 %v878_v5, %v877_v3 }
 0x400   : > { %v1230_v9 = vpop.f32.mrb[24].mxu0  ;;  %917 = vmatpush1.bf16.msra.mxu1 %v897_v8 }
 0x401   : > { %v814_v10 = vpop.f32.mrb[25].mxu0  ;;  %918 = vmatprep.subr.bf16.mxu1 %v1372_v57  ;;  %v883_v12 = vmul.f32 %v1230_v9, %v1230_v9 }
 0x402   : > { %v1231_v11 = vpop.f32.mrb[26].mxu0  ;;  %v881_v15 = vmul.f32 %v814_v10, %v814_v10 }
 0x403   : > { %v884_v13 = vmul.f32 %v1231_v11, %v1231_v11  ;;  %v817_v14 = vpop.f32.mrb[27].mxu0 }
 0x404   : > { %v882_v16 = vmul.f32 %v817_v14, %v817_v14  ;;  %919 = vmatpush1.bf16.msra.mxu1 %v898_v7 }
 0x405   : > { %v900_v17 = vpack.c.bf16 %v884_v13, %v883_v12  ;;  %920 = vmatprep.subr.bf16.mxu1 %v1372_v57 }
 0x406   : > { %v899_v18 = vpack.c.bf16 %v882_v16, %v881_v15 }
 0x408   : > { %v1234_v19 = vpop.f32.mrb[28].mxu0  ;;  %921 = vmatpush1.bf16.msra.mxu1 %v899_v18 }
 0x409   : > { %v830_v20 = vpop.f32.mrb[29].mxu0  ;;  %922 = vmatprep.subr.bf16.mxu1 %v1372_v57  ;;  %v887_v21 = vmul.f32 %v1234_v19, %v1234_v19 }
 0x40a   : > { %v1235_v0 = vpop.f32.mrb[30].mxu0  ;;  %v885_v24 = vmul.f32 %v830_v20, %v830_v20 }
 0x40b   : > { %v888_v22 = vmul.f32 %v1235_v0, %v1235_v0  ;;  %v833_v23 = vpop.f32.mrb[31].mxu0 }
 0x40c   : > { %v886_v25 = vmul.f32 %v833_v23, %v833_v23  ;;  %923 = vmatpush1.bf16.msra.mxu1 %v900_v17 }
 0x40d   : > { %v902_v26 = vpack.c.bf16 %v888_v22, %v887_v21  ;;  %924 = vmatprep.subr.bf16.mxu1 %v1372_v57 }
 0x40e   : > { %v901_v27 = vpack.c.bf16 %v886_v25, %v885_v24 }
 0x410   : > { %v1238_v28 = vpop.f32.mrb[32].mxu0  ;;  %925 = vmatpush1.bf16.msra.mxu1 %v901_v27 }
 0x411   : > { %v846_v29 = vpop.f32.mrb[33].mxu0  ;;  %926 = vmatprep.subr.bf16.mxu1 %v1372_v57  ;;  %v891_v31 = vmul.f32 %v1238_v28, %v1238_v28 }
 0x412   : > { %v1239_v30 = vpop.f32.mrb[34].mxu0  ;;  %v889_v34 = vmul.f32 %v846_v29, %v846_v29 }
 0x413   : > { %v892_v32 = vmul.f32 %v1239_v30, %v1239_v30  ;;  %v849_v33 = vpop.f32.mrb[35].mxu0 }
 0x414   : > { %v890_v35 = vmul.f32 %v849_v33, %v849_v33  ;;  %927 = vmatpush1.bf16.msra.mxu1 %v902_v26 }
 0x415   : > { %v904_v36 = vpack.c.bf16 %v892_v32, %v891_v31  ;;  %928 = vmatprep.subr.bf16.mxu1 %v1372_v57 }
 0x416   : > { %v903_v37 = vpack.c.bf16 %v890_v35, %v889_v34 }
 0x418   : > { %v1242_v38 = vpop.f32.mrb[36].mxu0  ;;  %929 = vmatpush1.bf16.msra.mxu1 %v903_v37 }
 0x419   : > { %v862_v39 = vpop.f32.mrb[37].mxu0  ;;  %930 = vmatprep.subr.bf16.mxu1 %v1372_v57  ;;  %v895_v41 = vmul.f32 %v1242_v38, %v1242_v38 }
 0x41a   : > { %v1243_v40 = vpop.f32.mrb[38].mxu0  ;;  %v893_v44 = vmul.f32 %v862_v39, %v862_v39 }
 0x41b   : > { %v896_v42 = vmul.f32 %v1243_v40, %v1243_v40  ;;  %v865_v43 = vpop.f32.mrb[39].mxu0 }
 0x41c   : > { %v894_v45 = vmul.f32 %v865_v43, %v865_v43  ;;  %931 = vmatpush1.bf16.msra.mxu1 %v904_v36 }
 0x41d   : > { %v906_v46 = vpack.c.bf16 %v896_v42, %v895_v41  ;;  %932 = vmatprep.subr.bf16.mxu1 %v1372_v57 }
 0x41e   : > { %v905_v47 = vpack.c.bf16 %v894_v45, %v893_v44 }
 0x420   : > { %933 = vmatpush1.bf16.msra.mxu1 %v905_v47 }
 0x421   : > { %934 = vmatprep.subr.bf16.mxu1 %v1372_v57 }
 0x424   : > { %935 = vmatpush1.bf16.msra.mxu1 %v906_v46 }
 0x427   : > { %949 = vmatmul.mubr.bf16.vlgmr.msra.gmra.mrb[32].mxu1 %v1091_v48 }
 0x4fa   : > { %v950_v49 = vpop.f32.mrb[32].mxu1 }
 0x4fb   : > { %v1094_v50 = vclamps-f32 %v950_v49, 100.0  ;;  %v952_v51 = vpop.f32.mrb[33].mxu1 }
 0x4fc   : > { %v953_v4 = vpop.f32.mrb[34].mxu1 }
 0x4fd   : > { %959 = vst.msk [vmem:[%s280_s16] sm:$0x1f] %vm958_vm6, %v1094_v50  ;;  %v954_v52 = vpop.f32.mrb[35].mxu1 }
 0x4fe PF: > { %s16_s23 = sadd.s32 1, %s1368_s23   ;;  %s1602_s21 = smov %s1364_s22 }
 0x4ff   : > { %p13_p5 = scmp.ge.s32.totalorder %s16_s23, 4   ;;  %s1603_s22 = smov %s1605_s24 }
 0x501   :  { %15 = sbr.rel (!%p13_p5) target bundleno = 2 (0x2), region = 74 }

</bundles_post_ra>
